<compile_context>
chip_gen: v7x
topology: tpu7x:2x2x1
jax: 0.10.0
libtpu: 0.0.40
codegen_flags: <defaults>
</compile_context>

<pallas_src>
import jax
import jax.numpy as jnp
from jax.experimental import pallas as pl
from jax.experimental.pallas import tpu as pltpu

LANE = 128


def _round_up(x, m):
    return ((x + m - 1) // m) * m


def _pad2(a, rows, cols):
    return jnp.pad(a, ((0, rows - a.shape[0]), (0, cols - a.shape[1])))


def inverse_dynamics_kernel(
    obs_ref, nobs_ref,                        # (TB, D_OBS) f32 batch tiles (true feature width)
    w1_ref, b1_ref, w2_ref, b2_ref,           # observation encoder (bf16 weights, f32 biases)
    wpa_ref, wpb_ref, bp_ref,                 # trunk: concat weight split into two halves
    wh_ref, bh_ref,                           # fused heads packed into one 128-lane slab
    out_ref,                                  # (TB, DP_OUT) f32 lane-dense output slab
):
    def encode(x_f32):
        x = x_f32.astype(jnp.bfloat16)
        h = jnp.dot(x, w1_ref[...], preferred_element_type=jnp.float32) + b1_ref[...]
        h = jnp.maximum(h, 0.0).astype(jnp.bfloat16)
        e = jnp.dot(h, w2_ref[...], preferred_element_type=jnp.float32) + b2_ref[...]
        return e.astype(jnp.bfloat16)

    # --- ObservationEncoder applied to obs and next_obs (shared resident W1/W2) ---
    embed = encode(obs_ref[...])
    next_embed = encode(nobs_ref[...])

    # --- ActionPredictor trunk: relu(concat([e, ne]) @ Wp + bp), concat-free ---
    z = (
        jnp.dot(embed, wpa_ref[...], preferred_element_type=jnp.float32)
        + jnp.dot(next_embed, wpb_ref[...], preferred_element_type=jnp.float32)
        + bp_ref[...]
    )
    z = jnp.maximum(z, 0.0).astype(jnp.bfloat16)

    # --- fused heads: one lane-dense (128-wide) matmul producing both predictions ---
    out_ref[...] = (
        jnp.dot(z, wh_ref[...], preferred_element_type=jnp.float32) + bh_ref[...]
    ).astype(out_ref.dtype)


def pack_params(params):
    """One-time weight packing: pad to 128 lanes, cast matmul operands to bf16,
    fuse the two heads into one 128-lane slab.  Call once, reuse every step."""
    d_obs, d_hid = params["w1"].shape
    d_emb = params["w2"].shape[1]
    d_pred = params["wp_a"].shape[1]
    d_act = params["w_act"].shape[1]

    dp_hid = _round_up(d_hid, LANE)
    dp_emb = _round_up(d_emb, LANE)
    dp_pred = _round_up(d_pred, LANE)
    dp_out = _round_up(2 * d_act, LANE)   # both heads share one 128-lane output slab

    packed = {
        # observation encoder (K dim kept at true d_obs; zero padding exact elsewhere)
        "w1": _pad2(params["w1"], d_obs, dp_hid).astype(jnp.bfloat16),
        "b1": _pad2(params["b1"], 1, dp_hid).astype(jnp.float32),
        "w2": _pad2(params["w2"], dp_hid, dp_emb).astype(jnp.bfloat16),
        "b2": _pad2(params["b2"], 1, dp_emb).astype(jnp.float32),
        # trunk (concat-free split)
        "wpa": _pad2(params["wp_a"], dp_emb, dp_pred).astype(jnp.bfloat16),
        "wpb": _pad2(params["wp_b"], dp_emb, dp_pred).astype(jnp.bfloat16),
        "bp": _pad2(params["bp"], 1, dp_pred).astype(jnp.float32),
        # fused heads: columns [0:d_act]=prev, [d_act:2*d_act]=act, rest zero
        "wh": _pad2(jnp.concatenate([params["w_prev"], params["w_act"]], axis=1),
                    dp_pred, dp_out).astype(jnp.bfloat16),
        "bh": _pad2(jnp.concatenate([params["b_prev"], params["b_act"]], axis=1),
                    1, dp_out).astype(jnp.float32),
    }
    meta = {"d_obs": d_obs, "d_act": d_act}
    return packed, meta


def inverse_dynamics(obs, next_obs, packed, meta, *, tile_b=512):
    B, d_obs = obs.shape
    d_act = meta["d_act"]
    p = packed
    dp_hid = p["w1"].shape[1]
    dp_emb = p["w2"].shape[1]
    dp_pred = p["wpa"].shape[1]
    dp_out = p["wh"].shape[1]

    # Tile selection: big tiles to amortize ~0.35us/step grid overhead; round small
    # batches to 16 rows (bf16 sublane packing).  For B > tile_b this yields >=2
    # grid steps so the "parallel" batch axis can shard across v7x's 2 TensorCores.
    tb = min(tile_b, _round_up(B, 16))
    b_pad = _round_up(B, tb)
    n_tiles = b_pad // tb

    if b_pad != B:
        obs = jnp.pad(obs, ((0, b_pad - B), (0, 0)))
        next_obs = jnp.pad(next_obs, ((0, b_pad - B), (0, 0)))
    obs = obs.astype(jnp.float32)
    next_obs = next_obs.astype(jnp.float32)

    def resident(shape):
        # whole-array block, same block index every grid step -> stays VMEM-resident
        return pl.BlockSpec(shape, lambda i: (0,) * len(shape))

    x_spec = pl.BlockSpec((tb, d_obs), lambda i: (i, 0))

    flops = (
        2 * (2 * b_pad) * d_obs * dp_hid        # encoder layer 1 (obs + next_obs)
        + 2 * (2 * b_pad) * dp_hid * dp_emb     # encoder layer 2
        + 2 * (2 * b_pad) * dp_emb * dp_pred    # trunk (two halves)
        + 2 * b_pad * dp_pred * dp_out          # fused heads
    )
    weight_bytes = sum(int(p[k].size) * p[k].dtype.itemsize
                       for k in ("w1", "b1", "w2", "b2", "wpa", "wpb", "bp", "wh", "bh"))
    bytes_accessed = 2 * b_pad * d_obs * 4 + weight_bytes + b_pad * dp_out * 4

    out = pl.pallas_call(
        inverse_dynamics_kernel,
        out_shape=jax.ShapeDtypeStruct((b_pad, dp_out), jnp.float32),
        grid_spec=pltpu.PrefetchScalarGridSpec(
            num_scalar_prefetch=0,
            grid=(n_tiles,),
            in_specs=[
                x_spec, x_spec,
                resident(p["w1"].shape), resident(p["b1"].shape),
                resident(p["w2"].shape), resident(p["b2"].shape),
                resident(p["wpa"].shape), resident(p["wpb"].shape),
                resident(p["bp"].shape),
                resident(p["wh"].shape), resident(p["bh"].shape),
            ],
            out_specs=pl.BlockSpec((tb, dp_out), lambda i: (i, 0)),
        ),
        compiler_params=pltpu.CompilerParams(
            dimension_semantics=("parallel",),
        ),
        cost_estimate=pl.CostEstimate(
            flops=flops, transcendentals=0, bytes_accessed=bytes_accessed),
    )(obs, next_obs,
      p["w1"], p["b1"], p["w2"], p["b2"],
      p["wpa"], p["wpb"], p["bp"], p["wh"], p["bh"])

    prev_hat = out[:B, :d_act]
    act_hat = out[:B, d_act:2 * d_act]
    return prev_hat, act_hat


def make_params(key, d_obs, d_hidden, d_embed, d_pred, d_act):
    ks = jax.random.split(key, 7)
    scale = 0.05
    return {
        # observation encoder
        "w1": scale * jax.random.normal(ks[0], (d_obs, d_hidden), jnp.float32),
        "b1": jnp.zeros((1, d_hidden), jnp.float32),
        "w2": scale * jax.random.normal(ks[1], (d_hidden, d_embed), jnp.float32),
        "b2": jnp.zeros((1, d_embed), jnp.float32),
        # action predictor trunk: weight for concat([e, ne]) split into two halves
        "wp_a": scale * jax.random.normal(ks[2], (d_embed, d_pred), jnp.float32),
        "wp_b": scale * jax.random.normal(ks[3], (d_embed, d_pred), jnp.float32),
        "bp": jnp.zeros((1, d_pred), jnp.float32),
        # heads
        "w_prev": scale * jax.random.normal(ks[4], (d_pred, d_act), jnp.float32),
        "b_prev": jnp.zeros((1, d_act), jnp.float32),
        "w_act": scale * jax.random.normal(ks[5], (d_pred, d_act), jnp.float32),
        "b_act": jnp.zeros((1, d_act), jnp.float32),
    }


def reference(obs, next_obs, p):
    def enc(x):
        h = jnp.maximum(x @ p["w1"] + p["b1"], 0.0)
        return h @ p["w2"] + p["b2"]

    e, ne = enc(obs), enc(next_obs)
    z = jnp.maximum(e @ p["wp_a"] + ne @ p["wp_b"] + p["bp"], 0.0)
    return z @ p["w_prev"] + p["b_prev"], z @ p["w_act"] + p["b_act"]


if __name__ == "__main__":
    B, D_OBS, D_HID, D_EMB, D_PRED, D_ACT = 8, 32, 64, 32, 64, 8

    key = jax.random.PRNGKey(0)
    k_obs, k_nobs, k_params = jax.random.split(key, 3)
    obs = jax.random.normal(k_obs, (B, D_OBS), jnp.float32)
    next_obs = jax.random.normal(k_nobs, (B, D_OBS), jnp.float32)
    params = make_params(k_params, D_OBS, D_HID, D_EMB, D_PRED, D_ACT)
    packed, meta = pack_params(params)   # one-time weight packing

    # single-tile path (small batch)
    prev_hat, act_hat = inverse_dynamics(obs, next_obs, packed, meta)
    jax.block_until_ready((prev_hat, act_hat))
    ref_prev, ref_act = reference(obs, next_obs, params)
    # bf16 matmul operands with f32 accumulation -> relaxed tolerance vs f32 reference
    assert jnp.allclose(prev_hat, ref_prev, atol=1e-2, rtol=1e-2)
    assert jnp.allclose(act_hat, ref_act, atol=1e-2, rtol=1e-2)

    # multi-tile grid path (exercises batch tiling + padding + parallel grid axis)
    B2 = 300
    obs2 = jax.random.normal(jax.random.PRNGKey(1), (B2, D_OBS), jnp.float32)
    nobs2 = jax.random.normal(jax.random.PRNGKey(2), (B2, D_OBS), jnp.float32)
    prev2, act2 = inverse_dynamics(obs2, nobs2, packed, meta, tile_b=128)
    jax.block_until_ready((prev2, act2))
    rp2, ra2 = reference(obs2, nobs2, params)
    assert jnp.allclose(prev2, rp2, atol=1e-2, rtol=1e-2)
    assert jnp.allclose(act2, ra2, atol=1e-2, rtol=1e-2)

    print("KERNEL_OK")
</pallas_src>

<mosaic_0001>
module attributes {stable_mosaic.version = 11 : i64} {
  func.func @inverse_dynamics_kernel(%arg0: i32, %arg1: memref<16x32xf32, #tpu.memory_space<vmem>>, %arg2: memref<16x32xf32, #tpu.memory_space<vmem>>, %arg3: memref<32x128xbf16, #tpu.memory_space<vmem>>, %arg4: memref<1x128xf32, #tpu.memory_space<vmem>>, %arg5: memref<128x128xbf16, #tpu.memory_space<vmem>>, %arg6: memref<1x128xf32, #tpu.memory_space<vmem>>, %arg7: memref<128x128xbf16, #tpu.memory_space<vmem>>, %arg8: memref<128x128xbf16, #tpu.memory_space<vmem>>, %arg9: memref<1x128xf32, #tpu.memory_space<vmem>>, %arg10: memref<128x128xbf16, #tpu.memory_space<vmem>>, %arg11: memref<1x128xf32, #tpu.memory_space<vmem>>, %arg12: memref<16x128xf32, #tpu.memory_space<vmem>>) attributes {dimension_semantics = [#tpu.dimension_semantics<parallel>], iteration_bounds = array<i64: 1>, scalar_prefetch = 0 : i64, scratch_operands = 0 : i64, tpu.core_type = #tpu.core_type<tc>, window_params = [{transform_indices = @transform_0, window_bounds = array<i64: 16, 32>}, {transform_indices = @transform_1, window_bounds = array<i64: 16, 32>}, {pipeline_mode = #tpu.pipeline_mode<synchronous>, transform_indices = @transform_2, window_bounds = array<i64: 32, 128>}, {pipeline_mode = #tpu.pipeline_mode<synchronous>, transform_indices = @transform_3, window_bounds = array<i64: 1, 128>}, {pipeline_mode = #tpu.pipeline_mode<synchronous>, transform_indices = @transform_4, window_bounds = array<i64: 128, 128>}, {pipeline_mode = #tpu.pipeline_mode<synchronous>, transform_indices = @transform_5, window_bounds = array<i64: 1, 128>}, {pipeline_mode = #tpu.pipeline_mode<synchronous>, transform_indices = @transform_6, window_bounds = array<i64: 128, 128>}, {pipeline_mode = #tpu.pipeline_mode<synchronous>, transform_indices = @transform_7, window_bounds = array<i64: 128, 128>}, {pipeline_mode = #tpu.pipeline_mode<synchronous>, transform_indices = @transform_8, window_bounds = array<i64: 1, 128>}, {pipeline_mode = #tpu.pipeline_mode<synchronous>, transform_indices = @transform_9, window_bounds = array<i64: 128, 128>}, {pipeline_mode = #tpu.pipeline_mode<synchronous>, transform_indices = @transform_10, window_bounds = array<i64: 1, 128>}, {transform_indices = @transform_11, window_bounds = array<i64: 16, 128>}]} {
    %c0 = arith.constant 0 : index
    %c0_0 = arith.constant 0 : index
    %0 = vector.load %arg1[%c0, %c0_0] : memref<16x32xf32, #tpu.memory_space<vmem>>, vector<16x32xf32>
    %1 = arith.truncf %0 : vector<16x32xf32> to vector<16x32xbf16>
    %c0_1 = arith.constant 0 : index
    %c0_2 = arith.constant 0 : index
    %2 = vector.load %arg3[%c0_1, %c0_2] : memref<32x128xbf16, #tpu.memory_space<vmem>>, vector<32x128xbf16>
    %cst = arith.constant dense<0.000000e+00> : vector<16x128xf32>
    %3 = tpu.matmul %1, %2, %cst {dimension_numbers = #tpu.dot_dimension_numbers<[1], [0], [0], [1], [0, 0, 1, 1], [], []>} : vector<16x32xbf16>, vector<32x128xbf16>, vector<16x128xf32> -> vector<16x128xf32>
    %c0_3 = arith.constant 0 : index
    %c0_4 = arith.constant 0 : index
    %4 = vector.load %arg4[%c0_3, %c0_4] : memref<1x128xf32, #tpu.memory_space<vmem>>, vector<1x128xf32>
    %5 = vector.broadcast %4 : vector<1x128xf32> to vector<16x128xf32>
    %6 = arith.addf %3, %5 : vector<16x128xf32>
    %cst_5 = arith.constant 0.000000e+00 : f32
    %7 = vector.broadcast %cst_5 : f32 to vector<16x128xf32>
    %8 = arith.maximumf %6, %7 : vector<16x128xf32>
    %9 = arith.truncf %8 : vector<16x128xf32> to vector<16x128xbf16>
    %c0_6 = arith.constant 0 : index
    %c0_7 = arith.constant 0 : index
    %10 = vector.load %arg5[%c0_6, %c0_7] : memref<128x128xbf16, #tpu.memory_space<vmem>>, vector<128x128xbf16>
    %cst_8 = arith.constant dense<0.000000e+00> : vector<16x128xf32>
    %11 = tpu.matmul %9, %10, %cst_8 {dimension_numbers = #tpu.dot_dimension_numbers<[1], [0], [0], [1], [0, 0, 1, 1], [], []>} : vector<16x128xbf16>, vector<128x128xbf16>, vector<16x128xf32> -> vector<16x128xf32>
    %c0_9 = arith.constant 0 : index
    %c0_10 = arith.constant 0 : index
    %12 = vector.load %arg6[%c0_9, %c0_10] : memref<1x128xf32, #tpu.memory_space<vmem>>, vector<1x128xf32>
    %13 = vector.broadcast %12 : vector<1x128xf32> to vector<16x128xf32>
    %14 = arith.addf %11, %13 : vector<16x128xf32>
    %15 = arith.truncf %14 : vector<16x128xf32> to vector<16x128xbf16>
    %c0_11 = arith.constant 0 : index
    %c0_12 = arith.constant 0 : index
    %16 = vector.load %arg2[%c0_11, %c0_12] : memref<16x32xf32, #tpu.memory_space<vmem>>, vector<16x32xf32>
    %17 = arith.truncf %16 : vector<16x32xf32> to vector<16x32xbf16>
    %c0_13 = arith.constant 0 : index
    %c0_14 = arith.constant 0 : index
    %18 = vector.load %arg3[%c0_13, %c0_14] : memref<32x128xbf16, #tpu.memory_space<vmem>>, vector<32x128xbf16>
    %cst_15 = arith.constant dense<0.000000e+00> : vector<16x128xf32>
    %19 = tpu.matmul %17, %18, %cst_15 {dimension_numbers = #tpu.dot_dimension_numbers<[1], [0], [0], [1], [0, 0, 1, 1], [], []>} : vector<16x32xbf16>, vector<32x128xbf16>, vector<16x128xf32> -> vector<16x128xf32>
    %c0_16 = arith.constant 0 : index
    %c0_17 = arith.constant 0 : index
    %20 = vector.load %arg4[%c0_16, %c0_17] : memref<1x128xf32, #tpu.memory_space<vmem>>, vector<1x128xf32>
    %21 = vector.broadcast %20 : vector<1x128xf32> to vector<16x128xf32>
    %22 = arith.addf %19, %21 : vector<16x128xf32>
    %cst_18 = arith.constant 0.000000e+00 : f32
    %23 = vector.broadcast %cst_18 : f32 to vector<16x128xf32>
    %24 = arith.maximumf %22, %23 : vector<16x128xf32>
    %25 = arith.truncf %24 : vector<16x128xf32> to vector<16x128xbf16>
    %c0_19 = arith.constant 0 : index
    %c0_20 = arith.constant 0 : index
    %26 = vector.load %arg5[%c0_19, %c0_20] : memref<128x128xbf16, #tpu.memory_space<vmem>>, vector<128x128xbf16>
    %cst_21 = arith.constant dense<0.000000e+00> : vector<16x128xf32>
    %27 = tpu.matmul %25, %26, %cst_21 {dimension_numbers = #tpu.dot_dimension_numbers<[1], [0], [0], [1], [0, 0, 1, 1], [], []>} : vector<16x128xbf16>, vector<128x128xbf16>, vector<16x128xf32> -> vector<16x128xf32>
    %c0_22 = arith.constant 0 : index
    %c0_23 = arith.constant 0 : index
    %28 = vector.load %arg6[%c0_22, %c0_23] : memref<1x128xf32, #tpu.memory_space<vmem>>, vector<1x128xf32>
    %29 = vector.broadcast %28 : vector<1x128xf32> to vector<16x128xf32>
    %30 = arith.addf %27, %29 : vector<16x128xf32>
    %31 = arith.truncf %30 : vector<16x128xf32> to vector<16x128xbf16>
    %c0_24 = arith.constant 0 : index
    %c0_25 = arith.constant 0 : index
    %32 = vector.load %arg7[%c0_24, %c0_25] : memref<128x128xbf16, #tpu.memory_space<vmem>>, vector<128x128xbf16>
    %cst_26 = arith.constant dense<0.000000e+00> : vector<16x128xf32>
    %33 = tpu.matmul %15, %32, %cst_26 {dimension_numbers = #tpu.dot_dimension_numbers<[1], [0], [0], [1], [0, 0, 1, 1], [], []>} : vector<16x128xbf16>, vector<128x128xbf16>, vector<16x128xf32> -> vector<16x128xf32>
    %c0_27 = arith.constant 0 : index
    %c0_28 = arith.constant 0 : index
    %34 = vector.load %arg8[%c0_27, %c0_28] : memref<128x128xbf16, #tpu.memory_space<vmem>>, vector<128x128xbf16>
    %cst_29 = arith.constant dense<0.000000e+00> : vector<16x128xf32>
    %35 = tpu.matmul %31, %34, %cst_29 {dimension_numbers = #tpu.dot_dimension_numbers<[1], [0], [0], [1], [0, 0, 1, 1], [], []>} : vector<16x128xbf16>, vector<128x128xbf16>, vector<16x128xf32> -> vector<16x128xf32>
    %36 = arith.addf %33, %35 : vector<16x128xf32>
    %c0_30 = arith.constant 0 : index
    %c0_31 = arith.constant 0 : index
    %37 = vector.load %arg9[%c0_30, %c0_31] : memref<1x128xf32, #tpu.memory_space<vmem>>, vector<1x128xf32>
    %38 = vector.broadcast %37 : vector<1x128xf32> to vector<16x128xf32>
    %39 = arith.addf %36, %38 : vector<16x128xf32>
    %cst_32 = arith.constant 0.000000e+00 : f32
    %40 = vector.broadcast %cst_32 : f32 to vector<16x128xf32>
    %41 = arith.maximumf %39, %40 : vector<16x128xf32>
    %42 = arith.truncf %41 : vector<16x128xf32> to vector<16x128xbf16>
    %c0_33 = arith.constant 0 : index
    %c0_34 = arith.constant 0 : index
    %43 = vector.load %arg10[%c0_33, %c0_34] : memref<128x128xbf16, #tpu.memory_space<vmem>>, vector<128x128xbf16>
    %cst_35 = arith.constant dense<0.000000e+00> : vector<16x128xf32>
    %44 = tpu.matmul %42, %43, %cst_35 {dimension_numbers = #tpu.dot_dimension_numbers<[1], [0], [0], [1], [0, 0, 1, 1], [], []>} : vector<16x128xbf16>, vector<128x128xbf16>, vector<16x128xf32> -> vector<16x128xf32>
    %c0_36 = arith.constant 0 : index
    %c0_37 = arith.constant 0 : index
    %45 = vector.load %arg11[%c0_36, %c0_37] : memref<1x128xf32, #tpu.memory_space<vmem>>, vector<1x128xf32>
    %46 = vector.broadcast %45 : vector<1x128xf32> to vector<16x128xf32>
    %47 = arith.addf %44, %46 : vector<16x128xf32>
    %c0_38 = arith.constant 0 : index
    %c0_39 = arith.constant 0 : index
    %48 = vector.load %arg12[%c0_38, %c0_39] : memref<16x128xf32, #tpu.memory_space<vmem>>, vector<16x128xf32>
    tpu.vector_store %arg12[%c0_38, %c0_39], %47 {strides = array<i32>} : memref<16x128xf32, #tpu.memory_space<vmem>>, vector<16x128xf32>,
    return
  }
  func.func @transform_0(%arg0: i32) -> (i32, i32) {
    %c0_i32 = arith.constant 0 : i32
    %c0_i32_0 = arith.constant 0 : i32
    return %arg0, %c0_i32 : i32, i32
  }
  func.func @transform_1(%arg0: i32) -> (i32, i32) {
    %c0_i32 = arith.constant 0 : i32
    %c0_i32_0 = arith.constant 0 : i32
    return %arg0, %c0_i32 : i32, i32
  }
  func.func @transform_2(%arg0: i32) -> (i32, i32) {
    %c0_i32 = arith.constant 0 : i32
    %c0_i32_0 = arith.constant 0 : i32
    %c0_i32_1 = arith.constant 0 : i32
    return %c0_i32, %c0_i32_0 : i32, i32
  }
  func.func @transform_3(%arg0: i32) -> (i32, i32) {
    %c0_i32 = arith.constant 0 : i32
    %c0_i32_0 = arith.constant 0 : i32
    %c0_i32_1 = arith.constant 0 : i32
    return %c0_i32, %c0_i32_0 : i32, i32
  }
  func.func @transform_4(%arg0: i32) -> (i32, i32) {
    %c0_i32 = arith.constant 0 : i32
    %c0_i32_0 = arith.constant 0 : i32
    %c0_i32_1 = arith.constant 0 : i32
    return %c0_i32, %c0_i32_0 : i32, i32
  }
  func.func @transform_5(%arg0: i32) -> (i32, i32) {
    %c0_i32 = arith.constant 0 : i32
    %c0_i32_0 = arith.constant 0 : i32
    %c0_i32_1 = arith.constant 0 : i32
    return %c0_i32, %c0_i32_0 : i32, i32
  }
  func.func @transform_6(%arg0: i32) -> (i32, i32) {
    %c0_i32 = arith.constant 0 : i32
    %c0_i32_0 = arith.constant 0 : i32
    %c0_i32_1 = arith.constant 0 : i32
    return %c0_i32, %c0_i32_0 : i32, i32
  }
  func.func @transform_7(%arg0: i32) -> (i32, i32) {
    %c0_i32 = arith.constant 0 : i32
    %c0_i32_0 = arith.constant 0 : i32
    %c0_i32_1 = arith.constant 0 : i32
    return %c0_i32, %c0_i32_0 : i32, i32
  }
  func.func @transform_8(%arg0: i32) -> (i32, i32) {
    %c0_i32 = arith.constant 0 : i32
    %c0_i32_0 = arith.constant 0 : i32
    %c0_i32_1 = arith.constant 0 : i32
    return %c0_i32, %c0_i32_0 : i32, i32
  }
  func.func @transform_9(%arg0: i32) -> (i32, i32) {
    %c0_i32 = arith.constant 0 : i32
    %c0_i32_0 = arith.constant 0 : i32
    %c0_i32_1 = arith.constant 0 : i32
    return %c0_i32, %c0_i32_0 : i32, i32
  }
  func.func @transform_10(%arg0: i32) -> (i32, i32) {
    %c0_i32 = arith.constant 0 : i32
    %c0_i32_0 = arith.constant 0 : i32
    %c0_i32_1 = arith.constant 0 : i32
    return %c0_i32, %c0_i32_0 : i32, i32
  }
  func.func @transform_11(%arg0: i32) -> (i32, i32) {
    %c0_i32 = arith.constant 0 : i32
    %c0_i32_0 = arith.constant 0 : i32
    return %arg0, %c0_i32 : i32, i32
  }
}

</mosaic_0001>

<bundles_post_ra>
// kernel: tpu_custom_call.1
= control target key start
LH: loop header
LB: loop body
LE: loop exit
PB: predicated region body
PF: predicated region fallthrough
CT: control target
= control target key end

     0   :  { %16 = vsyncpa [#allocation3], 0  ;;  %s1477_s0 = inlined_call_operand.hbm [shape: f32[16,32], index: 0, kind: input, shape index: {}]   ;;  %s1478_s1 = inlined_call_operand.hbm [shape: f32[16,32], index: 1, kind: input, shape index: {}]   ;;  %s1479_s2 = inlined_call_operand.hbm [shape: bf16[32,128], index: 2, kind: input, shape index: {}]   ;;  %s1480_s3 = inlined_call_operand.vmem [shape: f32[1,128], index: 3, kind: input, shape index: {}]   ;;  %s1481_s4 = inlined_call_operand.hbm [shape: bf16[128,128], index: 4, kind: input, shape index: {}]   ;;  %s1482_s5 = inlined_call_operand.vmem [shape: f32[1,128], index: 5, kind: input, shape index: {}]   ;;  %s1483_s6 = inlined_call_operand.hbm [shape: bf16[128,128], index: 6, kind: input, shape index: {}]   ;;  %s1484_s7 = inlined_call_operand.hbm [shape: bf16[128,128], index: 7, kind: input, shape index: {}]   ;;  %s1485_s8 = inlined_call_operand.vmem [shape: f32[1,128], index: 8, kind: input, shape index: {}]   ;;  %s1486_s9 = inlined_call_operand.hbm [shape: bf16[128,128], index: 9, kind: input, shape index: {}]   ;;  %s1487_s10 = inlined_call_operand.vmem [shape: f32[1,128], index: 10, kind: input, shape index: {}]   ;;  %s1488_s11 = inlined_call_operand.hbm [shape: f32[16,128], index: 11, kind: output, shape index: {}]  }
   0x1   :  { %17 = vsyncpa [#allocation6], 0 }
   0x2   :  { %18 = vsyncpa [#allocation9], 0 }
   0x3   :  { %19 = vsyncpa [#allocation12], 0 }
   0x4   :  { %20 = vsyncpa [#allocation4], 0  ;;  %s1211_s17 = smov [#allocation5]   ;;  %s1025_s21 = scalar_lea.hbm %s1478_s1, 256 }
   0x5   :  { %s38_s18 = sshll.u32 %s1211_s17, 4  ;;  %p1026_p0 = scmp.ne.s32.totalorder %s1478_s1, %s1025_s21  ;;  %s39_s18 = int_to_ptr.vmem [resolvable:$true] %s38_s18 }
   0x6   :  { %p1029_p1 = scmp.lt.u32.totalorder %s1025_s21, %s1478_s1 }
   0x8   :  { %p1031_p2 = pnand %p1029_p1, %p1026_p0 }
   0xa   :  { %1034 = shalt.err (!%p1031_p2)
}
   0xb   :  { %s1035_s26 = scalar_lea.vmem %s39_s18, 256  ;;  %p1040_p4 = scmp.lt.s32.totalorder %s39_s18, %s39_s18 }
   0xc   :  { %p1036_p3 = scmp.ne.s32.totalorder %s39_s18, %s1035_s26  ;;  %p1041_p5 = scmp.lt.s32.totalorder %s1035_s26, %s1035_s26 }
   0xe   :  { %p1042_p6 = por %p1041_p5, %p1040_p4 }
  0x10   :  { %p1043_p7 = pnand %p1042_p6, %p1036_p3 }
  0x12   :  { %1046 = shalt.err (!%p1043_p7)
}
  0x13   :  { %s1212_s27 = smov 128   ;;  %s1213_s28 = smov 8  }
  0x14   :  { %44 = dma.hbm_to_vmem [thread:$0]  %s1478_s1, 256, %s39_s18, [#allocation6], %s1212_s27, %s1212_s27, %s1213_s28  }
  0x15   :  { %s1214_s12 = smov [#allocation8]   ;;  %s1215_s14 = smov [#allocation11]  }
  0x16   :  { %s64_s13 = sshll.u32 %s1214_s12, 4  ;;  %s90_s15 = sshll.u32 %s1215_s14, 4  ;;  %s65_s13 = int_to_ptr.vmem [resolvable:$true] %s64_s13  ;;  %s91_s15 = int_to_ptr.vmem [resolvable:$true] %s90_s15 }
  0x17   :  { %s1047_s19 = scalar_lea.hbm %s1481_s4, 1024 }
  0x18   :  { %p1048_p8 = scmp.ne.s32.totalorder %s1481_s4, %s1047_s19  ;;  %p1051_p9 = scmp.lt.u32.totalorder %s1047_s19, %s1481_s4 }
  0x1a   :  { %p1053_p10 = pnand %p1051_p9, %p1048_p8 }
  0x1c   :  { %1056 = shalt.err (!%p1053_p10)
}
  0x1d   :  { %s1057_s1 = scalar_lea.vmem %s65_s13, 1024  ;;  %p1062_p12 = scmp.lt.s32.totalorder %s65_s13, %s65_s13 }
  0x1e   :  { %p1058_p11 = scmp.ne.s32.totalorder %s65_s13, %s1057_s1  ;;  %p1063_p13 = scmp.lt.s32.totalorder %s1057_s1, %s1057_s1 }
  0x20   :  { %p1064_p0 = por %p1063_p13, %p1062_p12 }
  0x22   :  { %p1065_p1 = pnand %p1064_p0, %p1058_p11 }
  0x24   :  { %1068 = shalt.err (!%p1065_p1)
}
  0x25   :  { %s1216_s18 = smov 64   ;;  %s1217_s24 = smov 4  }
  0x26   :  { %70 = dma.hbm_to_vmem [thread:$0]  %s1481_s4, 1024, %s65_s13, [#allocation9], %s1216_s18, %s1216_s18, %s1217_s24  }
  0x27   :  { %s1069_s12 = scalar_lea.hbm %s1484_s7, 1024 }
  0x28   :  { %p1070_p2 = scmp.ne.s32.totalorder %s1484_s7, %s1069_s12  ;;  %p1073_p3 = scmp.lt.u32.totalorder %s1069_s12, %s1484_s7 }
  0x2a   :  { %p1075_p4 = pnand %p1073_p3, %p1070_p2 }
  0x2c   :  { %1078 = shalt.err (!%p1075_p4)
}
  0x2d   :  { %s1079_s20 = scalar_lea.vmem %s91_s15, 1024  ;;  %p1084_p6 = scmp.lt.s32.totalorder %s91_s15, %s91_s15 }
  0x2e   :  { %p1080_p5 = scmp.ne.s32.totalorder %s91_s15, %s1079_s20  ;;  %p1085_p7 = scmp.lt.s32.totalorder %s1079_s20, %s1079_s20 }
  0x30   :  { %p1086_p8 = por %p1085_p7, %p1084_p6 }
  0x32   :  { %p1087_p9 = pnand %p1086_p8, %p1080_p5 }
  0x34   :  { %1090 = shalt.err (!%p1087_p9)
}
  0x35   :  { %96 = dma.hbm_to_vmem [thread:$0]  %s1484_s7, 1024, %s91_s15, [#allocation12], %s1216_s18, %s1216_s18, %s1217_s24  }
  0x36   :  { %s1218_s21 = smov [#allocation2]   ;;  %s1219_s23 = smov [#allocation7]  }
  0x37   :  { %s26_s22 = sshll.u32 %s1218_s21, 4  ;;  %s50_s1 = sshll.u32 %s1219_s23, 4  ;;  %s27_s22 = int_to_ptr.vmem [resolvable:$true] %s26_s22  ;;  %s51_s1 = int_to_ptr.vmem [resolvable:$true] %s50_s1 }
  0x38   :  { %s1091_s29 = scalar_lea.hbm %s1477_s0, 256 }
  0x39   :  { %p1092_p10 = scmp.ne.s32.totalorder %s1477_s0, %s1091_s29  ;;  %p1095_p11 = scmp.lt.u32.totalorder %s1091_s29, %s1477_s0 }
  0x3b   :  { %p1097_p12 = pnand %p1095_p11, %p1092_p10 }
  0x3d   :  { %1100 = shalt.err (!%p1097_p12)
}
  0x3e   :  { %s1101_s7 = scalar_lea.vmem %s27_s22, 256  ;;  %p1106_p0 = scmp.lt.s32.totalorder %s27_s22, %s27_s22 }
  0x3f   :  { %p1102_p13 = scmp.ne.s32.totalorder %s27_s22, %s1101_s7  ;;  %p1107_p1 = scmp.lt.s32.totalorder %s1101_s7, %s1101_s7 }
  0x41   :  { %p1108_p2 = por %p1107_p1, %p1106_p0 }
  0x43   :  { %p1109_p3 = pnand %p1108_p2, %p1102_p13 }
  0x45   :  { %1112 = shalt.err (!%p1109_p3)
}
  0x46   :  { %32 = dma.hbm_to_vmem [thread:$0]  %s1477_s0, 256, %s27_s22, [#allocation3], %s1212_s27, %s1212_s27, %s1213_s28  }
  0x47   :  { %s1113_s4 = scalar_lea.hbm %s1479_s2, 256 }
  0x48   :  { %p1114_p4 = scmp.ne.s32.totalorder %s1479_s2, %s1113_s4  ;;  %p1117_p5 = scmp.lt.u32.totalorder %s1113_s4, %s1479_s2 }
  0x4a   :  { %p1119_p6 = pnand %p1117_p5, %p1114_p4 }
  0x4c   :  { %1122 = shalt.err (!%p1119_p6)
}
  0x4d   :  { %s1123_s26 = scalar_lea.vmem %s51_s1, 256  ;;  %p1128_p8 = scmp.lt.s32.totalorder %s51_s1, %s51_s1 }
  0x4e   :  { %p1124_p7 = scmp.ne.s32.totalorder %s51_s1, %s1123_s26  ;;  %p1129_p9 = scmp.lt.s32.totalorder %s1123_s26, %s1123_s26 }
  0x50   :  { %p1130_p10 = por %p1129_p9, %p1128_p8 }
  0x52   :  { %p1131_p11 = pnand %p1130_p10, %p1124_p7 }
  0x54   :  { %1134 = shalt.err (!%p1131_p11)
}
  0x55   :  { %56 = dma.hbm_to_vmem [thread:$0]  %s1479_s2, 256, %s51_s1, [#allocation6], %s1216_s18, %s1216_s18, %s1217_s24  }
  0x56   :  { %s1220_s29 = smov [#allocation10]   ;;  %s1221_s12 = smov [#allocation13]  }
  0x57   :  { %s78_s30 = sshll.u32 %s1220_s29, 4  ;;  %s104_s14 = sshll.u32 %s1221_s12, 4  ;;  %s79_s30 = int_to_ptr.vmem [resolvable:$true] %s78_s30  ;;  %s105_s14 = int_to_ptr.vmem [resolvable:$true] %s104_s14 }
  0x58   :  { %s1135_s15 = scalar_lea.hbm %s1483_s6, 1024 }
  0x59   :  { %p1136_p12 = scmp.ne.s32.totalorder %s1483_s6, %s1135_s15  ;;  %p1139_p13 = scmp.lt.u32.totalorder %s1135_s15, %s1483_s6 }
  0x5b   :  { %p1141_p0 = pnand %p1139_p13, %p1136_p12 }
  0x5d   :  { %1144 = shalt.err (!%p1141_p0)
}
  0x5e   :  { %s1145_s2 = scalar_lea.vmem %s79_s30, 1024  ;;  %p1150_p2 = scmp.lt.s32.totalorder %s79_s30, %s79_s30 }
  0x5f   :  { %p1146_p1 = scmp.ne.s32.totalorder %s79_s30, %s1145_s2  ;;  %p1151_p3 = scmp.lt.s32.totalorder %s1145_s2, %s1145_s2 }
  0x61   :  { %p1152_p4 = por %p1151_p3, %p1150_p2 }
  0x63   :  { %p1153_p5 = pnand %p1152_p4, %p1146_p1 }
  0x65   :  { %1156 = shalt.err (!%p1153_p5)
}
  0x66   :  { %84 = dma.hbm_to_vmem [thread:$0]  %s1483_s6, 1024, %s79_s30, [#allocation9], %s1216_s18, %s1216_s18, %s1217_s24  }
  0x67   :  { %s1157_s25 = scalar_lea.hbm %s1486_s9, 1024 }
  0x68   :  { %p1158_p6 = scmp.ne.s32.totalorder %s1486_s9, %s1157_s25  ;;  %p1161_p7 = scmp.lt.u32.totalorder %s1157_s25, %s1486_s9 }
  0x6a   :  { %p1163_p8 = pnand %p1161_p7, %p1158_p6 }
  0x6c   :  { %1166 = shalt.err (!%p1163_p8)
}
  0x6d   :  { %s1167_s12 = scalar_lea.vmem %s105_s14, 1024  ;;  %p1172_p10 = scmp.lt.s32.totalorder %s105_s14, %s105_s14 }
  0x6e   :  { %p1168_p9 = scmp.ne.s32.totalorder %s105_s14, %s1167_s12  ;;  %p1173_p11 = scmp.lt.s32.totalorder %s1167_s12, %s1167_s12 }
  0x70   :  { %p1174_p12 = por %p1173_p11, %p1172_p10 }
  0x72   :  { %p1175_p13 = pnand %p1174_p12, %p1168_p9 }
  0x74   :  { %1178 = shalt.err (!%p1175_p13)
}
  0x75   :  { %110 = dma.hbm_to_vmem [thread:$0]  %s1486_s9, 1024, %s105_s14, [#allocation12], %s1216_s18, %s1216_s18, %s1217_s24  }
  0x76   :  { %1201 = dma.done.wait [#allocation3], 256  }
  0x77   :  { %1202 = vsyncadd [#allocation3], 4294967040 }
  0x78   :  { %1203 = dma.done.wait [#allocation6], 512  }
  0x79   :  { %1204 = vsyncadd [#allocation6], 4294966784 }
  0x7a   :  { %1205 = dma.done.wait [#allocation9], 2048  }
  0x7b   :  { %1206 = vsyncadd [#allocation9], 4294965248 }
  0x7c   :  { %1207 = dma.done.wait [#allocation12], 2048  }
  0x7d   :  { %1208 = vsyncadd [#allocation12], 4294965248  ;;  %v1222_v0 = vmov 0.0   ;;  %vm1223_vm0 = vmmov 0   ;;  %v991_v1 = vld [vmem:[#allocation7] sm:$0xff]   ;;  %v992_v2 = vld [vmem:[#allocation7 + $0x8] sm:$0xff]  }
  0x7e   :  { %861 = vmatprep.subr.bf16.mxu0 %v1222_v0  ;;  %865 = vmatprep.mubr.msk.bf16.mxu0 %vm1223_vm0, %v1222_v0  ;;  %v135_v3 = vld [vmem:[#allocation2] sm:$0xff]  ;;  %v136_v4 = vld [vmem:[#allocation2 + $0x8] sm:$0xff]  ;;  %v993_v5 = vld [vmem:[#allocation8] sm:$0xff]   ;;  %vm161_vm1 = vcmask 261120   ;;  %s1224_s15 = smov [#allocation14]  }
  0x7f   :  { %869 = vmatprep.subr.bf16.mxu1 %v1222_v0  ;;  %885 = vmatprep.mubr.msk.bf16.mxu1 %vm1223_vm0, %v1222_v0  ;;  %v137_v6 = vpack.c.bf16 %v136_v4, %v135_v3  ;;  %v994_v7 = vld [vmem:[#allocation8 + $0x8] sm:$0xff]   ;;  %v322_v8 = vld [vmem:[#allocation5] sm:$0xff]  ;;  %v995_v10 = vld [vmem:[#allocation8 + $0x10] sm:$0xff]   ;;  %s755_s17 = sshll.u32 %s1224_s15, 4  ;;  %s756_s17 = int_to_ptr.vmem [resolvable:$true] %s755_s17 }
  0x80   :  { %862 = vmatpush3.bf16.msra.mxu0 %v991_v1  ;;  %870 = vmatpush3.bf16.msra.mxu1 %v993_v5  ;;  %v323_v9 = vld [vmem:[#allocation5 + $0x8] sm:$0xff]  ;;  %v996_v12 = vld [vmem:[#allocation8 + $0x18] sm:$0xff]   ;;  %v997_v13 = vld [vmem:[#allocation8 + $0x20] sm:$0xff]   ;;  %p1184_p1 = scmp.lt.s32.totalorder %s756_s17, %s756_s17 }
  0x81   :  { %863 = vmatprep.subr.bf16.mxu0 %v1222_v0  ;;  %871 = vmatprep.subr.bf16.mxu1 %v1222_v0  ;;  %v324_v11 = vpack.c.bf16 %v323_v9, %v322_v8  ;;  %v998_v14 = vld [vmem:[#allocation8 + $0x28] sm:$0xff]   ;;  %v999_v15 = vld [vmem:[#allocation8 + $0x30] sm:$0xff]   ;;  %v1000_v16 = vld [vmem:[#allocation8 + $0x38] sm:$0xff]  }
  0x82   :  { %v770_v17 = vld [vmem:[%s1480_s3] ss:$0 sm:$0xff]  ;;  %v1003_v26 = vld [vmem:[#allocation11] sm:$0xff]   ;;  %v1005_v32 = vld [vmem:[#allocation11 + $0x8] sm:$0xff]  }
  0x83   :  { %v1001_v37 = vld [vmem:[#allocation10] sm:$0xff]   ;;  %v1007_v38 = vld [vmem:[#allocation11 + $0x10] sm:$0xff]   ;;  %v1002_v40 = vld [vmem:[#allocation10 + $0x8] sm:$0xff]  }
  0x84   :  { %864 = vmatpush3.bf16.msra.mxu0 %v992_v2  ;;  %872 = vmatpush3.bf16.msra.mxu1 %v994_v7  ;;  %v1009_v41 = vld [vmem:[#allocation11 + $0x18] sm:$0xff]   ;;  %v1004_v42 = vld [vmem:[#allocation10 + $0x10] sm:$0xff]   ;;  %v1008_v44 = vld [vmem:[#allocation10 + $0x20] sm:$0xff]  }
  0x85   :  { %889 = vmatprep.subr.bf16.mxu0 %v1222_v0  ;;  %873 = vmatprep.subr.bf16.mxu1 %v1222_v0  ;;  %v1006_v43 = vld [vmem:[#allocation10 + $0x18] sm:$0xff]   ;;  %v1010_v45 = vld [vmem:[#allocation10 + $0x28] sm:$0xff]   ;;  %v1011_v46 = vld [vmem:[#allocation11 + $0x20] sm:$0xff]  }
  0x86   :  { %v1012_v47 = vld [vmem:[#allocation10 + $0x30] sm:$0xff]   ;;  %v1013_v48 = vld [vmem:[#allocation11 + $0x28] sm:$0xff]   ;;  %v1014_v49 = vld [vmem:[#allocation10 + $0x38] sm:$0xff]  }
  0x87   :  { %866 = vmatmul.mubr.msk.bf16.vlgmr.msra.gmra.mrb[0].mxu0 %vm161_vm1, %v137_v6  ;;  %v1015_v50 = vld [vmem:[#allocation11 + $0x30] sm:$0xff]   ;;  %v1016_v51 = vld [vmem:[#allocation11 + $0x38] sm:$0xff]   ;;  %v1017_v3 = vld [vmem:[#allocation13] sm:$0xff]  }
  0x88   :  { %890 = vmatpush3.bf16.msra.mxu0 %v991_v1  ;;  %893 = vmatprep.mubr.msk.bf16.mxu0 %vm1223_vm0, %v1222_v0  ;;  %v774_v52 = vld [vmem:[%s1482_s5] ss:$0 sm:$0xff]  ;;  %v1021_v8 = vld [vmem:[#allocation13 + $0x20] sm:$0xff]   ;;  %v1022_v9 = vld [vmem:[#allocation13 + $0x28] sm:$0xff]  }
  0x89   :  { %891 = vmatprep.subr.bf16.mxu0 %v1222_v0  ;;  %874 = vmatpush3.bf16.msra.mxu1 %v995_v10  ;;  %v1019_v6 = vld [vmem:[#allocation13 + $0x10] sm:$0xff]  }
  0x8a   :  { %875 = vmatprep.subr.bf16.mxu1 %v1222_v0 }
  0x8c   :  { %892 = vmatpush3.bf16.msra.mxu0 %v992_v2 }
  0x8d   :  { %897 = vmatprep.subr.bf16.mxu0 %v1222_v0  ;;  %876 = vmatpush3.bf16.msra.mxu1 %v996_v12 }
  0x8e   :  { %877 = vmatprep.subr.bf16.mxu1 %v1222_v0 }
  0x8f   :  { %894 = vmatmul.mubr.msk.bf16.vlgmr.msra.gmra.mrb[4].mxu0 %vm161_vm1, %v324_v11  ;;  %v1024_v11 = vld [vmem:[#allocation13 + $0x38] sm:$0xff]  }
  0x90   :  { %898 = vmatpush3.bf16.msra.mxu0 %v993_v5  ;;  %913 = vmatprep.mubr.msk.bf16.mxu0 %vm1223_vm0, %v1222_v0  ;;  %v1018_v5 = vld [vmem:[#allocation13 + $0x8] sm:$0xff]  }
  0x91   :  { %899 = vmatprep.subr.bf16.mxu0 %v1222_v0  ;;  %878 = vmatpush3.bf16.msra.mxu1 %v997_v13 }
  0x92   :  { %879 = vmatprep.subr.bf16.mxu1 %v1222_v0 }
  0x94   :  { %900 = vmatpush3.bf16.msra.mxu0 %v994_v7  ;;  %v1020_v7 = vld [vmem:[#allocation13 + $0x18] sm:$0xff]  }
  0x95   :  { %901 = vmatprep.subr.bf16.mxu0 %v1222_v0  ;;  %880 = vmatpush3.bf16.msra.mxu1 %v998_v14 }
  0x96   :  { %881 = vmatprep.subr.bf16.mxu1 %v1222_v0 }
  0x98   :  { %902 = vmatpush3.bf16.msra.mxu0 %v995_v10  ;;  %v1023_v10 = vld [vmem:[#allocation13 + $0x30] sm:$0xff]  }
  0x99   :  { %903 = vmatprep.subr.bf16.mxu0 %v1222_v0  ;;  %882 = vmatpush3.bf16.msra.mxu1 %v999_v15 }
  0x9a   :  { %883 = vmatprep.subr.bf16.mxu1 %v1222_v0 }
  0x9c   :  { %904 = vmatpush3.bf16.msra.mxu0 %v996_v12 }
  0x9d   :  { %905 = vmatprep.subr.bf16.mxu0 %v1222_v0  ;;  %884 = vmatpush3.bf16.msra.mxu1 %v1000_v16 }
  0x9e   :  { %917 = vmatprep.subr.bf16.mxu1 %v1222_v0 }
  0xa0   :  { %906 = vmatpush3.bf16.msra.mxu0 %v997_v13 }
  0xa1   :  { %907 = vmatprep.subr.bf16.mxu0 %v1222_v0 }
  0xa4   :  { %908 = vmatpush3.bf16.msra.mxu0 %v998_v14 }
  0xa5   :  { %909 = vmatprep.subr.bf16.mxu0 %v1222_v0 }
  0xa8   :  { %910 = vmatpush3.bf16.msra.mxu0 %v999_v15 }
  0xa9   :  { %911 = vmatprep.subr.bf16.mxu0 %v1222_v0 }
  0xac   :  { %912 = vmatpush3.bf16.msra.mxu0 %v1000_v16 }
  0xad   :  { %937 = vmatprep.subr.bf16.mxu0 %v1222_v0 }
 0x15a   :  { %v199_v18 = vpop.f32.mrb[0].mxu0 }
 0x15b   :  { %v200_v19 = vadd.f32 %v770_v17, %v199_v18  ;;  %v867_v20 = vpop.f32.mrb[1].mxu0 }
 0x15c   :  { %v202_v21 = vpop.f32.mrb[2].mxu0 }
 0x15d   :  { %v203_v22 = vadd.f32 %v770_v17, %v202_v21  ;;  %v868_v23 = vpop.f32.mrb[3].mxu0  ;;  %v206_v24 = vmax.f32 %v200_v19, 0.0 }
 0x15f   :  { %v207_v25 = vmax.f32 %v203_v22, 0.0 }
 0x161   :  { %v208_v27 = vpack.c.bf16 %v207_v25, %v206_v24 }
 0x162   :  { %v362_v28 = vpop.f32.mrb[4].mxu0 }
 0x163   :  { %v363_v29 = vadd.f32 %v770_v17, %v362_v28  ;;  %886 = vmatmul.mubr.bf16.vlgmr.msra.gmra.mrb[0].mxu1 %v208_v27  ;;  %v895_v30 = vpop.f32.mrb[5].mxu0  ;;  %v801_v27 = vld [vmem:[%s1487_s10] ss:$0 sm:$0xff] }
 0x164   :  { %v365_v31 = vpop.f32.mrb[6].mxu0  ;;  %918 = vmatpush3.bf16.msra.mxu1 %v1003_v26  ;;  %933 = vmatprep.mubr.msk.bf16.mxu1 %vm1223_vm0, %v1222_v0 }
 0x165   :  { %v366_v33 = vadd.f32 %v770_v17, %v365_v31  ;;  %v896_v34 = vpop.f32.mrb[7].mxu0  ;;  %919 = vmatprep.subr.bf16.mxu1 %v1222_v0  ;;  %v369_v35 = vmax.f32 %v363_v29, 0.0  ;;  %v800_v17 = vld [vmem:[%s1485_s8] ss:$0 sm:$0xff]  ;;  %s1179_s8 = scalar_lea.vmem %s756_s17, 256 }
 0x166   :  { %p1180_p0 = scmp.ne.s32.totalorder %s756_s17, %s1179_s8  ;;  %p1185_p2 = scmp.lt.s32.totalorder %s1179_s8, %s1179_s8 }
 0x167   :  { %v370_v36 = vmax.f32 %v366_v33, 0.0 }
 0x168   :  { %920 = vmatpush3.bf16.msra.mxu1 %v1005_v32  ;;  %p1186_p3 = por %p1185_p2, %p1184_p1 }
 0x169   :  { %v371_v39 = vpack.c.bf16 %v370_v36, %v369_v35  ;;  %921 = vmatprep.subr.bf16.mxu1 %v1222_v0 }
 0x16a   :  { %p1187_p4 = pnand %p1186_p3, %p1180_p0 }
 0x16b   :  { %914 = vmatmul.mubr.bf16.vlgmr.msra.gmra.mrb[8].mxu0 %v371_v39 }
 0x16c   :  { %938 = vmatpush3.bf16.msra.mxu0 %v1001_v37  ;;  %922 = vmatpush3.bf16.msra.mxu1 %v1007_v38 }
 0x16d   :  { %939 = vmatprep.subr.bf16.mxu0 %v1222_v0  ;;  %923 = vmatprep.subr.bf16.mxu1 %v1222_v0 }
 0x16e   :  { %953 = vmatprep.mubr.msk.bf16.mxu0 %vm1223_vm0, %v1222_v0 }
 0x170   :  { %940 = vmatpush3.bf16.msra.mxu0 %v1002_v40  ;;  %924 = vmatpush3.bf16.msra.mxu1 %v1009_v41 }
 0x171   :  { %941 = vmatprep.subr.bf16.mxu0 %v1222_v0  ;;  %925 = vmatprep.subr.bf16.mxu1 %v1222_v0 }
 0x174   :  { %942 = vmatpush3.bf16.msra.mxu0 %v1004_v42  ;;  %926 = vmatpush3.bf16.msra.mxu1 %v1011_v46 }
 0x175   :  { %943 = vmatprep.subr.bf16.mxu0 %v1222_v0  ;;  %927 = vmatprep.subr.bf16.mxu1 %v1222_v0 }
 0x178   :  { %944 = vmatpush3.bf16.msra.mxu0 %v1006_v43  ;;  %928 = vmatpush3.bf16.msra.mxu1 %v1013_v48 }
 0x179   :  { %945 = vmatprep.subr.bf16.mxu0 %v1222_v0  ;;  %929 = vmatprep.subr.bf16.mxu1 %v1222_v0 }
 0x17c   :  { %946 = vmatpush3.bf16.msra.mxu0 %v1008_v44  ;;  %930 = vmatpush3.bf16.msra.mxu1 %v1015_v50 }
 0x17d   :  { %947 = vmatprep.subr.bf16.mxu0 %v1222_v0  ;;  %931 = vmatprep.subr.bf16.mxu1 %v1222_v0 }
 0x180   :  { %948 = vmatpush3.bf16.msra.mxu0 %v1010_v45  ;;  %932 = vmatpush3.bf16.msra.mxu1 %v1016_v51 }
 0x181   :  { %949 = vmatprep.subr.bf16.mxu0 %v1222_v0  ;;  %957 = vmatprep.subr.bf16.mxu1 %v1222_v0 }
 0x184   :  { %950 = vmatpush3.bf16.msra.mxu0 %v1012_v47 }
 0x185   :  { %951 = vmatprep.subr.bf16.mxu0 %v1222_v0 }
 0x188   :  { %952 = vmatpush3.bf16.msra.mxu0 %v1014_v49 }
 0x236   :  { %v314_v53 = vpop.f32.mrb[0].mxu1 }
 0x237   :  { %v887_v54 = vpop.f32.mrb[1].mxu1  ;;  %v315_v56 = vadd.f32 %v774_v52, %v314_v53 }
 0x238   :  { %v317_v55 = vpop.f32.mrb[2].mxu1 }
 0x239   :  { %v318_v57 = vadd.f32 %v774_v52, %v317_v55  ;;  %v888_v58 = vpop.f32.mrb[3].mxu1 }
 0x23b   :  { %v321_v59 = vpack.c.bf16 %v318_v57, %v315_v56 }
 0x23d   :  { %954 = vmatmul.mubr.bf16.vlgmr.msra.gmra.mrb[12].mxu0 %v321_v59 }
 0x23e   :  { %v406_v60 = vpop.f32.mrb[8].mxu0 }
 0x23f   :  { %v915_v61 = vpop.f32.mrb[9].mxu0  ;;  %v407_v63 = vadd.f32 %v774_v52, %v406_v60 }
 0x240   :  { %v409_v62 = vpop.f32.mrb[10].mxu0 }
 0x241   :  { %v410_v1 = vadd.f32 %v774_v52, %v409_v62  ;;  %v916_v2 = vpop.f32.mrb[11].mxu0 }
 0x243   :  { %v413_v4 = vpack.c.bf16 %v410_v1, %v407_v63 }
 0x245   :  { %934 = vmatmul.mubr.bf16.vlgmr.msra.gmra.mrb[4].mxu1 %v413_v4 }
 0x246   :  { %958 = vmatpush3.bf16.msra.mxu1 %v1017_v3  ;;  %973 = vmatprep.mubr.msk.bf16.mxu1 %vm1223_vm0, %v1222_v0 }
 0x247   :  { %959 = vmatprep.subr.bf16.mxu1 %v1222_v0 }
 0x24a   :  { %960 = vmatpush3.bf16.msra.mxu1 %v1018_v5 }
 0x24b   :  { %961 = vmatprep.subr.bf16.mxu1 %v1222_v0 }
 0x24e   :  { %962 = vmatpush3.bf16.msra.mxu1 %v1019_v6 }
 0x24f   :  { %963 = vmatprep.subr.bf16.mxu1 %v1222_v0 }
 0x252   :  { %964 = vmatpush3.bf16.msra.mxu1 %v1020_v7 }
 0x253   :  { %965 = vmatprep.subr.bf16.mxu1 %v1222_v0 }
 0x256   :  { %966 = vmatpush3.bf16.msra.mxu1 %v1021_v8 }
 0x257   :  { %967 = vmatprep.subr.bf16.mxu1 %v1222_v0 }
 0x25a   :  { %968 = vmatpush3.bf16.msra.mxu1 %v1022_v9 }
 0x25b   :  { %969 = vmatprep.subr.bf16.mxu1 %v1222_v0 }
 0x25e   :  { %970 = vmatpush3.bf16.msra.mxu1 %v1023_v10 }
 0x25f   :  { %971 = vmatprep.subr.bf16.mxu1 %v1222_v0 }
 0x262   :  { %972 = vmatpush3.bf16.msra.mxu1 %v1024_v11 }
 0x310   :  { %v617_v12 = vpop.f32.mrb[12].mxu0 }
 0x311   :  { %v955_v13 = vpop.f32.mrb[13].mxu0 }
 0x312   :  { %v620_v14 = vpop.f32.mrb[14].mxu0 }
 0x313   :  { %v956_v15 = vpop.f32.mrb[15].mxu0 }
 0x318   :  { %v528_v16 = vpop.f32.mrb[4].mxu1 }
 0x319   :  { %v618_v18 = vadd.f32 %v617_v12, %v528_v16  ;;  %v935_v19 = vpop.f32.mrb[5].mxu1 }
 0x31a   :  { %v531_v20 = vpop.f32.mrb[6].mxu1 }
 0x31b   :  { %v631_v21 = vadd.f32 %v800_v17, %v618_v18  ;;  %v621_v22 = vadd.f32 %v620_v14, %v531_v20  ;;  %v936_v23 = vpop.f32.mrb[7].mxu1 }
 0x31d   :  { %v632_v24 = vadd.f32 %v800_v17, %v621_v22  ;;  %v633_v25 = vmax.f32 %v631_v21, 0.0 }
 0x31f   :  { %v634_v0 = vmax.f32 %v632_v24, 0.0 }
 0x321   :  { %v635_v26 = vpack.c.bf16 %v634_v0, %v633_v25 }
 0x323   :  { %974 = vmatmul.mubr.bf16.vlgmr.msra.gmra.mrb[8].mxu1 %v635_v26 }
 0x3f6   :  { %v741_v28 = vpop.f32.mrb[8].mxu1 }
 0x3f7   :  { %v742_v29 = vadd.f32 %v801_v27, %v741_v28  ;;  %v975_v30 = vpop.f32.mrb[9].mxu1 }
 0x3f8   :  { %v744_v31 = vpop.f32.mrb[10].mxu1 }
 0x3f9   :  { %748 = vst [vmem:[#allocation14] sm:$0xff] %v742_v29  ;;  %v745_v32 = vadd.f32 %v801_v27, %v744_v31  ;;  %v976_v33 = vpop.f32.mrb[11].mxu1 }
 0x3fb   :  { %749 = vst [vmem:[#allocation14 + $0x8] sm:$0xff] %v745_v32 }
 0x3fc   :  { %1190 = shalt.err (!%p1187_p4)
}
 0x3fd   :  { %s1191_s20 = scalar_lea.hbm %s1488_s11, 256 }
 0x3fe   :  { %p1192_p5 = scmp.ne.s32.totalorder %s1488_s11, %s1191_s20  ;;  %p1195_p6 = scmp.lt.u32.totalorder %s1191_s20, %s1488_s11 }
 0x400   :  { %p1197_p7 = pnand %p1195_p6, %p1192_p5 }
 0x402   :  { %1200 = shalt.err (!%p1197_p7)
}
 0x403   :  { %761 = dma.vmem_to_hbm [thread:$0]  %s756_s17, 256, %s1488_s11, [#allocation4], %s1212_s27, %s1212_s27, %s1213_s28  }
 0x404   :  { %1209 = dma.done.wait [#allocation4], 256  }
 0x405   :  { %1210 = vsyncadd [#allocation4], 4294967040 }
 0x406   :  { %765 = vsyncpa [#allocation3], 1 }
 0x407   :  { %766 = vsyncpa [#allocation6], 1 }
 0x408   :  { %767 = vsyncpa [#allocation9], 1 }
 0x409   :  { %768 = vsyncpa [#allocation12], 1 }
 0x40a   :  { %769 = vsyncpa [#allocation4], 1 }

</bundles_post_ra>
